<compile_context>
chip_gen: v6e
topology: v6e:2x2x1
jax: 0.10.0
libtpu: 0.0.40
codegen_flags: <defaults>
</compile_context>

<pallas_src>
import jax
import jax.numpy as jnp
from jax.experimental import pallas as pl
from jax.experimental.pallas import tpu as pltpu

BN_EPS = 1e-5
LANE = 128  # padded lane width for all hidden/output dims


def _bn_relu(z, gamma, beta):
    """BatchNorm1d (training mode, biased variance) + ReLU.

    Batch stats via ones-row MXU matmuls so the cross-sublane reduction stays off
    the XLU. Zero-padded feature columns stay exactly zero (beta pads are zero).
    """
    n = z.shape[0]
    inv_n = 1.0 / n
    ones = jnp.ones((1, n), jnp.float32)
    mean = jnp.dot(ones, z, preferred_element_type=jnp.float32) * inv_n      # [1, C]
    zc = z - mean
    var = jnp.dot(ones, zc * zc, preferred_element_type=jnp.float32) * inv_n  # [1, C]
    zn = zc * jax.lax.rsqrt(var + BN_EPS)
    return jnp.maximum(zn * gamma + beta, 0.0)


def sage_mlp_kernel(x_ref, a_ref,
                    wcat1_ref, bl1_ref,
                    wcat2_ref, bl2_ref,
                    w1_ref, b1_ref, g1_ref, be1_ref,
                    w2_ref, b2_ref, g2_ref, be2_ref,
                    w3_ref, b3_ref,
                    out_ref):
    x = x_ref[...]          # [N, F]   bf16
    a = a_ref[...]          # [N, N]   bf16

    # ---- SAGEConv 1 (fused lin_l/lin_r): [agg | x] @ [wl1; wr1] + bl1, ReLU ----
    agg = jnp.dot(a, x, preferred_element_type=jnp.float32).astype(jnp.bfloat16)
    cat1 = jnp.concatenate([agg, x], axis=-1)                      # [N, 2F] bf16
    h = jnp.dot(cat1, wcat1_ref[...], preferred_element_type=jnp.float32) + bl1_ref[...]
    h = jnp.maximum(h, 0.0).astype(jnp.bfloat16)                   # [N, 128]

    # ---- SAGEConv 2 (fused) ----
    agg2 = jnp.dot(a, h, preferred_element_type=jnp.float32).astype(jnp.bfloat16)
    cat2 = jnp.concatenate([agg2, h], axis=-1)                     # [N, 256] bf16
    h2 = jnp.dot(cat2, wcat2_ref[...], preferred_element_type=jnp.float32) + bl2_ref[...]
    h2 = jnp.maximum(h2, 0.0).astype(jnp.bfloat16)                 # [N, 128]

    # ---- MLP head: Linear -> BN -> ReLU -> Linear -> BN -> ReLU -> Linear ----
    z1 = jnp.dot(h2, w1_ref[...], preferred_element_type=jnp.float32) + b1_ref[...]
    z1 = _bn_relu(z1, g1_ref[...], be1_ref[...]).astype(jnp.bfloat16)
    z2 = jnp.dot(z1, w2_ref[...], preferred_element_type=jnp.float32) + b2_ref[...]
    z2 = _bn_relu(z2, g2_ref[...], be2_ref[...]).astype(jnp.bfloat16)
    # Lane-dense [N, 128] output; only column 0 is meaningful (w3/b3 zero-padded).
    out_ref[...] = jnp.dot(z2, w3_ref[...], preferred_element_type=jnp.float32) + b3_ref[...]


def edge_index_to_dense_mean_adj(edge_index, num_nodes):
    """A[dst, src] = 1/in_deg(dst); zero-in-degree rows stay all-zero (mean aggr)."""
    # TODO(synk): for sparse real graphs use scalar-prefetched neighbor lists instead
    # of densifying to O(N^2).
    src, dst = edge_index[0], edge_index[1]
    adj = jnp.zeros((num_nodes, num_nodes), jnp.float32).at[dst, src].add(1.0)
    deg = adj.sum(axis=1, keepdims=True)
    return adj / jnp.maximum(deg, 1.0)


def _pad_cols(w, to, value=0.0):
    return jnp.pad(w, ((0, 0), (0, to - w.shape[1])), constant_values=value)


def _pad_rows(w, to):
    return jnp.pad(w, ((0, to - w.shape[0]), (0, 0)))


def pack_params(p):
    """Fuse lin_l/lin_r weights, zero-pad hidden dims to 128 lanes, cast to bf16."""
    bf16 = jnp.bfloat16
    h2 = p["w2"].shape[1]                       # 64

    # SAGEConv1: fused weight [2F, 128]
    wcat1 = _pad_cols(jnp.concatenate([p["wl1"], p["wr1"]], axis=0), LANE).astype(bf16)
    bl1 = _pad_cols(p["bl1"], LANE)

    # SAGEConv2: each [H,H] -> [128,128], stacked to [256, 128]
    wl2 = _pad_cols(_pad_rows(p["wl2"], LANE), LANE)
    wr2 = _pad_cols(_pad_rows(p["wr2"], LANE), LANE)
    wcat2 = jnp.concatenate([wl2, wr2], axis=0).astype(bf16)
    bl2 = _pad_cols(p["bl2"], LANE)

    # fc layer 1: [H,128] -> [128,128]
    w1 = _pad_rows(p["w1"], LANE).astype(bf16)
    b1, g1, be1 = p["b1"], p["g1"], p["be1"]

    # fc layer 2: [128,64] -> [128,128]; pad gamma with 1, beta/bias with 0
    w2 = _pad_cols(p["w2"], LANE).astype(bf16)
    b2 = _pad_cols(p["b2"], LANE)
    g2 = _pad_cols(p["g2"], LANE, value=1.0)
    be2 = _pad_cols(p["be2"], LANE)

    # fc layer 3: [64,1] -> [128,128] (column 0 is the real output)
    w3 = _pad_cols(_pad_rows(p["w3"], LANE), LANE).astype(bf16)
    b3 = _pad_cols(p["b3"], LANE)

    del h2
    return (wcat1, bl1, wcat2, bl2, w1, b1, g1, be1, w2, b2, g2, be2, w3, b3)


def sage_onehot_mlp2_forward(x, edge_index, params):
    """x: [N, ...] node features; edge_index: [2, E] int32. Returns [N] scores."""
    n = x.shape[0]
    x = x.reshape(n, -1).astype(jnp.float32)                 # x.flatten(start_dim=1)
    a = edge_index_to_dense_mean_adj(edge_index, n)

    x_bf = x.astype(jnp.bfloat16)
    a_bf = a.astype(jnp.bfloat16)
    packed = pack_params(params)
    inputs = (x_bf, a_bf) + packed

    vmem_spec = pl.BlockSpec(memory_space=pltpu.MemorySpace.VMEM)
    out_full = pl.pallas_call(
        sage_mlp_kernel,
        out_shape=jax.ShapeDtypeStruct((n, LANE), jnp.float32),   # lane-dense output
        in_specs=[vmem_spec] * len(inputs),
        out_specs=vmem_spec,
    )(*inputs)
    return out_full[:, 0]                                     # .squeeze()


# ---------------------------- reference & init ------------------------------

def reference_forward(x, edge_index, p):
    """Pure-JAX f32 reference matching the PyTorch module (training-mode BN)."""
    n = x.shape[0]
    x = x.reshape(n, -1).astype(jnp.float32)
    a = edge_index_to_dense_mean_adj(edge_index, n)

    def bn_relu(z, g, b):
        m = jnp.mean(z, axis=0, keepdims=True)
        v = jnp.mean((z - m) ** 2, axis=0, keepdims=True)
        return jnp.maximum((z - m) * jax.lax.rsqrt(v + BN_EPS) * g + b, 0.0)

    h = jnp.maximum((a @ x) @ p["wl1"] + p["bl1"] + x @ p["wr1"], 0.0)
    h2 = jnp.maximum((a @ h) @ p["wl2"] + p["bl2"] + h @ p["wr2"], 0.0)
    z1 = bn_relu(h2 @ p["w1"] + p["b1"], p["g1"], p["be1"])
    z2 = bn_relu(z1 @ p["w2"] + p["b2"], p["g2"], p["be2"])
    return (z2 @ p["w3"] + p["b3"])[:, 0]


def xavier_uniform(key, fan_in, fan_out):
    bound = (6.0 / (fan_in + fan_out)) ** 0.5
    return jax.random.uniform(key, (fan_in, fan_out), jnp.float32, -bound, bound)


def init_params(key, in_channels, hidden, hidden1=128, hidden2=64):
    ks = jax.random.split(key, 7)
    return {
        # SAGEConv1 (lin_l has bias, lin_r has no bias)
        "wl1": xavier_uniform(ks[0], in_channels, hidden),
        "bl1": jnp.zeros((1, hidden), jnp.float32),
        "wr1": xavier_uniform(ks[1], in_channels, hidden),
        # SAGEConv2
        "wl2": xavier_uniform(ks[2], hidden, hidden),
        "bl2": jnp.zeros((1, hidden), jnp.float32),
        "wr2": xavier_uniform(ks[3], hidden, hidden),
        # fc: Linear(H,128) + BN(128), Linear(128,64) + BN(64), Linear(64,1)
        "w1": xavier_uniform(ks[4], hidden, hidden1),
        "b1": jnp.zeros((1, hidden1), jnp.float32),
        "g1": jnp.ones((1, hidden1), jnp.float32),
        "be1": jnp.zeros((1, hidden1), jnp.float32),
        "w2": xavier_uniform(ks[5], hidden1, hidden2),
        "b2": jnp.zeros((1, hidden2), jnp.float32),
        "g2": jnp.ones((1, hidden2), jnp.float32),
        "be2": jnp.zeros((1, hidden2), jnp.float32),
        "w3": xavier_uniform(ks[6], hidden2, 1),
        "b3": jnp.zeros((1, 1), jnp.float32),
    }


if __name__ == "__main__":
    key = jax.random.PRNGKey(0)
    k_x, k_src, k_dst, k_p = jax.random.split(key, 4)

    N, C, K = 64, 4, 8          # 64 nodes, one-hot-ish features [N, 4, 8] -> flatten to [N, 32]
    E = 256                     # random directed edges
    HIDDEN = 32

    x = jax.random.normal(k_x, (N, C, K), jnp.float32)
    src = jax.random.randint(k_src, (E,), 0, N, jnp.int32)
    dst = jax.random.randint(k_dst, (E,), 0, N, jnp.int32)
    edge_index = jnp.stack([src, dst], axis=0)

    params = init_params(k_p, in_channels=C * K, hidden=HIDDEN)

    out = sage_onehot_mlp2_forward(x, edge_index, params)
    out = jax.block_until_ready(out)
    assert out.shape == (N,)
    assert bool(jnp.all(jnp.isfinite(out)))

    # Loose structural check vs f32 reference (kernel uses bf16 operands).
    ref = reference_forward(x, edge_index, params)
    err = float(jnp.max(jnp.abs(out - ref)))
    scale = float(jnp.max(jnp.abs(ref))) + 1.0
    assert err < 0.1 * scale, f"mismatch: max_abs_err={err} scale={scale}"

    print("KERNEL_OK")
</pallas_src>

<mosaic_0001>
module attributes {stable_mosaic.version = 11 : i64} {
  func.func @sage_mlp_kernel(%arg0: memref<64x32xbf16, #tpu.memory_space<vmem>>, %arg1: memref<64x64xbf16, #tpu.memory_space<vmem>>, %arg2: memref<64x128xbf16, #tpu.memory_space<vmem>>, %arg3: memref<1x128xf32, #tpu.memory_space<vmem>>, %arg4: memref<256x128xbf16, #tpu.memory_space<vmem>>, %arg5: memref<1x128xf32, #tpu.memory_space<vmem>>, %arg6: memref<128x128xbf16, #tpu.memory_space<vmem>>, %arg7: memref<1x128xf32, #tpu.memory_space<vmem>>, %arg8: memref<1x128xf32, #tpu.memory_space<vmem>>, %arg9: memref<1x128xf32, #tpu.memory_space<vmem>>, %arg10: memref<128x128xbf16, #tpu.memory_space<vmem>>, %arg11: memref<1x128xf32, #tpu.memory_space<vmem>>, %arg12: memref<1x128xf32, #tpu.memory_space<vmem>>, %arg13: memref<1x128xf32, #tpu.memory_space<vmem>>, %arg14: memref<128x128xbf16, #tpu.memory_space<vmem>>, %arg15: memref<1x128xf32, #tpu.memory_space<vmem>>, %arg16: memref<64x128xf32, #tpu.memory_space<vmem>>) attributes {dimension_semantics = [], scalar_prefetch = 0 : i64, scratch_operands = 0 : i64, tpu.core_type = #tpu.core_type<tc>} {
    %c0 = arith.constant 0 : index
    %c0_0 = arith.constant 0 : index
    %0 = vector.load %arg0[%c0, %c0_0] : memref<64x32xbf16, #tpu.memory_space<vmem>>, vector<64x32xbf16>
    %c0_1 = arith.constant 0 : index
    %c0_2 = arith.constant 0 : index
    %1 = vector.load %arg1[%c0_1, %c0_2] : memref<64x64xbf16, #tpu.memory_space<vmem>>, vector<64x64xbf16>
    %cst = arith.constant dense<0.000000e+00> : vector<64x32xf32>
    %2 = tpu.matmul %1, %0, %cst {dimension_numbers = #tpu.dot_dimension_numbers<[1], [0], [0], [1], [0, 0, 1, 1], [], []>} : vector<64x64xbf16>, vector<64x32xbf16>, vector<64x32xf32> -> vector<64x32xf32>
    %3 = arith.truncf %2 : vector<64x32xf32> to vector<64x32xbf16>
    %4 = tpu.concatenate %3, %0 in 1 : vector<64x32xbf16>, vector<64x32xbf16> -> vector<64x64xbf16>
    %c0_3 = arith.constant 0 : index
    %c0_4 = arith.constant 0 : index
    %5 = vector.load %arg2[%c0_3, %c0_4] : memref<64x128xbf16, #tpu.memory_space<vmem>>, vector<64x128xbf16>
    %cst_5 = arith.constant dense<0.000000e+00> : vector<64x128xf32>
    %6 = tpu.matmul %4, %5, %cst_5 {dimension_numbers = #tpu.dot_dimension_numbers<[1], [0], [0], [1], [0, 0, 1, 1], [], []>} : vector<64x64xbf16>, vector<64x128xbf16>, vector<64x128xf32> -> vector<64x128xf32>
    %c0_6 = arith.constant 0 : index
    %c0_7 = arith.constant 0 : index
    %7 = vector.load %arg3[%c0_6, %c0_7] : memref<1x128xf32, #tpu.memory_space<vmem>>, vector<1x128xf32>
    %8 = vector.broadcast %7 : vector<1x128xf32> to vector<64x128xf32>
    %9 = arith.addf %6, %8 : vector<64x128xf32>
    %cst_8 = arith.constant 0.000000e+00 : f32
    %10 = vector.broadcast %cst_8 : f32 to vector<64x128xf32>
    %11 = arith.maximumf %9, %10 : vector<64x128xf32>
    %12 = arith.truncf %11 : vector<64x128xf32> to vector<64x128xbf16>
    %cst_9 = arith.constant dense<0.000000e+00> : vector<64x128xf32>
    %13 = tpu.matmul %1, %12, %cst_9 {dimension_numbers = #tpu.dot_dimension_numbers<[1], [0], [0], [1], [0, 0, 1, 1], [], []>} : vector<64x64xbf16>, vector<64x128xbf16>, vector<64x128xf32> -> vector<64x128xf32>
    %14 = arith.truncf %13 : vector<64x128xf32> to vector<64x128xbf16>
    %15 = tpu.concatenate %14, %12 in 1 : vector<64x128xbf16>, vector<64x128xbf16> -> vector<64x256xbf16>
    %c0_10 = arith.constant 0 : index
    %c0_11 = arith.constant 0 : index
    %16 = vector.load %arg4[%c0_10, %c0_11] : memref<256x128xbf16, #tpu.memory_space<vmem>>, vector<256x128xbf16>
    %cst_12 = arith.constant dense<0.000000e+00> : vector<64x128xf32>
    %17 = tpu.matmul %15, %16, %cst_12 {dimension_numbers = #tpu.dot_dimension_numbers<[1], [0], [0], [1], [0, 0, 1, 1], [], []>} : vector<64x256xbf16>, vector<256x128xbf16>, vector<64x128xf32> -> vector<64x128xf32>
    %c0_13 = arith.constant 0 : index
    %c0_14 = arith.constant 0 : index
    %18 = vector.load %arg5[%c0_13, %c0_14] : memref<1x128xf32, #tpu.memory_space<vmem>>, vector<1x128xf32>
    %19 = vector.broadcast %18 : vector<1x128xf32> to vector<64x128xf32>
    %20 = arith.addf %17, %19 : vector<64x128xf32>
    %cst_15 = arith.constant 0.000000e+00 : f32
    %21 = vector.broadcast %cst_15 : f32 to vector<64x128xf32>
    %22 = arith.maximumf %20, %21 : vector<64x128xf32>
    %23 = arith.truncf %22 : vector<64x128xf32> to vector<64x128xbf16>
    %c0_16 = arith.constant 0 : index
    %c0_17 = arith.constant 0 : index
    %24 = vector.load %arg6[%c0_16, %c0_17] : memref<128x128xbf16, #tpu.memory_space<vmem>>, vector<128x128xbf16>
    %cst_18 = arith.constant dense<0.000000e+00> : vector<64x128xf32>
    %25 = tpu.matmul %23, %24, %cst_18 {dimension_numbers = #tpu.dot_dimension_numbers<[1], [0], [0], [1], [0, 0, 1, 1], [], []>} : vector<64x128xbf16>, vector<128x128xbf16>, vector<64x128xf32> -> vector<64x128xf32>
    %c0_19 = arith.constant 0 : index
    %c0_20 = arith.constant 0 : index
    %26 = vector.load %arg7[%c0_19, %c0_20] : memref<1x128xf32, #tpu.memory_space<vmem>>, vector<1x128xf32>
    %27 = vector.broadcast %26 : vector<1x128xf32> to vector<64x128xf32>
    %28 = arith.addf %25, %27 : vector<64x128xf32>
    %c0_21 = arith.constant 0 : index
    %c0_22 = arith.constant 0 : index
    %29 = vector.load %arg8[%c0_21, %c0_22] : memref<1x128xf32, #tpu.memory_space<vmem>>, vector<1x128xf32>
    %c0_23 = arith.constant 0 : index
    %c0_24 = arith.constant 0 : index
    %30 = vector.load %arg9[%c0_23, %c0_24] : memref<1x128xf32, #tpu.memory_space<vmem>>, vector<1x128xf32>
    %cst_25 = arith.constant 1.000000e+00 : f32
    %31 = vector.broadcast %cst_25 : f32 to vector<1x64xf32>
    %cst_26 = arith.constant dense<0.000000e+00> : vector<1x128xf32>
    %32 = tpu.matmul %31, %28, %cst_26 {dimension_numbers = #tpu.dot_dimension_numbers<[1], [0], [0], [1], [0, 0, 1, 1], [], []>} : vector<1x64xf32>, vector<64x128xf32>, vector<1x128xf32> -> vector<1x128xf32>
    %cst_27 = arith.constant 1.562500e-02 : f32
    %33 = vector.broadcast %cst_27 : f32 to vector<1x128xf32>
    %34 = arith.mulf %32, %33 : vector<1x128xf32>
    %35 = vector.broadcast %34 : vector<1x128xf32> to vector<64x128xf32>
    %36 = arith.subf %28, %35 : vector<64x128xf32>
    %37 = arith.mulf %36, %36 : vector<64x128xf32>
    %cst_28 = arith.constant dense<0.000000e+00> : vector<1x128xf32>
    %38 = tpu.matmul %31, %37, %cst_28 {dimension_numbers = #tpu.dot_dimension_numbers<[1], [0], [0], [1], [0, 0, 1, 1], [], []>} : vector<1x64xf32>, vector<64x128xf32>, vector<1x128xf32> -> vector<1x128xf32>
    %cst_29 = arith.constant 1.562500e-02 : f32
    %39 = vector.broadcast %cst_29 : f32 to vector<1x128xf32>
    %40 = arith.mulf %38, %39 : vector<1x128xf32>
    %cst_30 = arith.constant 9.99999974E-6 : f32
    %41 = vector.broadcast %cst_30 : f32 to vector<1x128xf32>
    %42 = arith.addf %40, %41 : vector<1x128xf32>
    %43 = math.rsqrt %42 : vector<1x128xf32>
    %44 = vector.broadcast %43 : vector<1x128xf32> to vector<64x128xf32>
    %45 = arith.mulf %36, %44 : vector<64x128xf32>
    %46 = vector.broadcast %29 : vector<1x128xf32> to vector<64x128xf32>
    %47 = arith.mulf %45, %46 : vector<64x128xf32>
    %48 = vector.broadcast %30 : vector<1x128xf32> to vector<64x128xf32>
    %49 = arith.addf %47, %48 : vector<64x128xf32>
    %cst_31 = arith.constant 0.000000e+00 : f32
    %50 = vector.broadcast %cst_31 : f32 to vector<64x128xf32>
    %51 = arith.maximumf %49, %50 : vector<64x128xf32>
    %52 = arith.truncf %51 : vector<64x128xf32> to vector<64x128xbf16>
    %c0_32 = arith.constant 0 : index
    %c0_33 = arith.constant 0 : index
    %53 = vector.load %arg10[%c0_32, %c0_33] : memref<128x128xbf16, #tpu.memory_space<vmem>>, vector<128x128xbf16>
    %cst_34 = arith.constant dense<0.000000e+00> : vector<64x128xf32>
    %54 = tpu.matmul %52, %53, %cst_34 {dimension_numbers = #tpu.dot_dimension_numbers<[1], [0], [0], [1], [0, 0, 1, 1], [], []>} : vector<64x128xbf16>, vector<128x128xbf16>, vector<64x128xf32> -> vector<64x128xf32>
    %c0_35 = arith.constant 0 : index
    %c0_36 = arith.constant 0 : index
    %55 = vector.load %arg11[%c0_35, %c0_36] : memref<1x128xf32, #tpu.memory_space<vmem>>, vector<1x128xf32>
    %56 = vector.broadcast %55 : vector<1x128xf32> to vector<64x128xf32>
    %57 = arith.addf %54, %56 : vector<64x128xf32>
    %c0_37 = arith.constant 0 : index
    %c0_38 = arith.constant 0 : index
    %58 = vector.load %arg12[%c0_37, %c0_38] : memref<1x128xf32, #tpu.memory_space<vmem>>, vector<1x128xf32>
    %c0_39 = arith.constant 0 : index
    %c0_40 = arith.constant 0 : index
    %59 = vector.load %arg13[%c0_39, %c0_40] : memref<1x128xf32, #tpu.memory_space<vmem>>, vector<1x128xf32>
    %cst_41 = arith.constant 1.000000e+00 : f32
    %60 = vector.broadcast %cst_41 : f32 to vector<1x64xf32>
    %cst_42 = arith.constant dense<0.000000e+00> : vector<1x128xf32>
    %61 = tpu.matmul %60, %57, %cst_42 {dimension_numbers = #tpu.dot_dimension_numbers<[1], [0], [0], [1], [0, 0, 1, 1], [], []>} : vector<1x64xf32>, vector<64x128xf32>, vector<1x128xf32> -> vector<1x128xf32>
    %cst_43 = arith.constant 1.562500e-02 : f32
    %62 = vector.broadcast %cst_43 : f32 to vector<1x128xf32>
    %63 = arith.mulf %61, %62 : vector<1x128xf32>
    %64 = vector.broadcast %63 : vector<1x128xf32> to vector<64x128xf32>
    %65 = arith.subf %57, %64 : vector<64x128xf32>
    %66 = arith.mulf %65, %65 : vector<64x128xf32>
    %cst_44 = arith.constant dense<0.000000e+00> : vector<1x128xf32>
    %67 = tpu.matmul %60, %66, %cst_44 {dimension_numbers = #tpu.dot_dimension_numbers<[1], [0], [0], [1], [0, 0, 1, 1], [], []>} : vector<1x64xf32>, vector<64x128xf32>, vector<1x128xf32> -> vector<1x128xf32>
    %cst_45 = arith.constant 1.562500e-02 : f32
    %68 = vector.broadcast %cst_45 : f32 to vector<1x128xf32>
    %69 = arith.mulf %67, %68 : vector<1x128xf32>
    %cst_46 = arith.constant 9.99999974E-6 : f32
    %70 = vector.broadcast %cst_46 : f32 to vector<1x128xf32>
    %71 = arith.addf %69, %70 : vector<1x128xf32>
    %72 = math.rsqrt %71 : vector<1x128xf32>
    %73 = vector.broadcast %72 : vector<1x128xf32> to vector<64x128xf32>
    %74 = arith.mulf %65, %73 : vector<64x128xf32>
    %75 = vector.broadcast %58 : vector<1x128xf32> to vector<64x128xf32>
    %76 = arith.mulf %74, %75 : vector<64x128xf32>
    %77 = vector.broadcast %59 : vector<1x128xf32> to vector<64x128xf32>
    %78 = arith.addf %76, %77 : vector<64x128xf32>
    %cst_47 = arith.constant 0.000000e+00 : f32
    %79 = vector.broadcast %cst_47 : f32 to vector<64x128xf32>
    %80 = arith.maximumf %78, %79 : vector<64x128xf32>
    %81 = arith.truncf %80 : vector<64x128xf32> to vector<64x128xbf16>
    %c0_48 = arith.constant 0 : index
    %c0_49 = arith.constant 0 : index
    %82 = vector.load %arg14[%c0_48, %c0_49] : memref<128x128xbf16, #tpu.memory_space<vmem>>, vector<128x128xbf16>
    %cst_50 = arith.constant dense<0.000000e+00> : vector<64x128xf32>
    %83 = tpu.matmul %81, %82, %cst_50 {dimension_numbers = #tpu.dot_dimension_numbers<[1], [0], [0], [1], [0, 0, 1, 1], [], []>} : vector<64x128xbf16>, vector<128x128xbf16>, vector<64x128xf32> -> vector<64x128xf32>
    %c0_51 = arith.constant 0 : index
    %c0_52 = arith.constant 0 : index
    %84 = vector.load %arg15[%c0_51, %c0_52] : memref<1x128xf32, #tpu.memory_space<vmem>>, vector<1x128xf32>
    %85 = vector.broadcast %84 : vector<1x128xf32> to vector<64x128xf32>
    %86 = arith.addf %83, %85 : vector<64x128xf32>
    %c0_53 = arith.constant 0 : index
    %c0_54 = arith.constant 0 : index
    %87 = vector.load %arg16[%c0_53, %c0_54] : memref<64x128xf32, #tpu.memory_space<vmem>>, vector<64x128xf32>
    tpu.vector_store %arg16[%c0_53, %c0_54], %86 {strides = array<i32>} : memref<64x128xf32, #tpu.memory_space<vmem>>, vector<64x128xf32>,
    return
  }
}

</mosaic_0001>

<bundles_post_ra>
// kernel: tpu_custom_call.1
= control target key start
LH: loop header
LB: loop body
LE: loop exit
PB: predicated region body
PF: predicated region fallthrough
CT: control target
= control target key end

     0   :  { %s2596_s0 = inlined_call_operand.vmem [shape: bf16[64,32], index: 0, kind: input, shape index: {}]   ;;  %s2597_s1 = inlined_call_operand.hbm [shape: bf16[64,64], index: 1, kind: input, shape index: {}]   ;;  %s2598_s2 = inlined_call_operand.hbm [shape: bf16[64,128], index: 2, kind: input, shape index: {}]   ;;  %s2599_s3 = inlined_call_operand.vmem [shape: f32[1,128], index: 3, kind: input, shape index: {}]   ;;  %s2600_s4 = inlined_call_operand.hbm [shape: bf16[256,128], index: 4, kind: input, shape index: {}]   ;;  %s2601_s5 = inlined_call_operand.vmem [shape: f32[1,128], index: 5, kind: input, shape index: {}]   ;;  %s2602_s6 = inlined_call_operand.hbm [shape: bf16[128,128], index: 6, kind: input, shape index: {}]   ;;  %s2603_s7 = inlined_call_operand.hbm [shape: f32[1,128], index: 7, kind: input, shape index: {}]   ;;  %s2604_s8 = inlined_call_operand.hbm [shape: f32[1,128], index: 8, kind: input, shape index: {}]   ;;  %s2605_s9 = inlined_call_operand.hbm [shape: f32[1,128], index: 9, kind: input, shape index: {}]   ;;  %s2606_s10 = inlined_call_operand.vmem [shape: bf16[128,128], index: 10, kind: input, shape index: {}]   ;;  %s2607_s11 = inlined_call_operand.vmem [shape: f32[1,128], index: 11, kind: input, shape index: {}]   ;;  %s2608_s12 = inlined_call_operand.vmem [shape: f32[1,128], index: 12, kind: input, shape index: {}]   ;;  %s2609_s13 = inlined_call_operand.vmem [shape: f32[1,128], index: 13, kind: input, shape index: {}]   ;;  %s2610_s14 = inlined_call_operand.hbm [shape: bf16[128,128], index: 14, kind: input, shape index: {}]   ;;  %s2611_s15 = inlined_call_operand.vmem [shape: f32[1,128], index: 15, kind: input, shape index: {}]   ;;  %s2612_s16 = inlined_call_operand.hbm [shape: f32[64,128], index: 16, kind: output, shape index: {}]  }
   0x1   :  { %2614 = sst [smem:[#allocation23_spill]] %s2596_s0 }
   0x2   :  { %21 = vsyncpa [#allocation3], 0 }
   0x3   :  { %22 = vsyncpa [#allocation6], 0 }
   0x4   :  { %23 = vsyncpa [#allocation9], 0 }
   0x5   :  { %24 = vsyncpa [#allocation12], 0 }
   0x6   :  { %25 = vsyncpa [#allocation15], 0 }
   0x7   :  { %26 = vsyncpa [#allocation4], 0  ;;  %s2276_s21 = smov [#allocation5]   ;;  %s2277_s23 = smov [#allocation8]  }
   0x8   :  { %s46_s22 = sshll.u32 %s2276_s21, 4  ;;  %s74_s24 = sshll.u32 %s2277_s23, 4  ;;  %s47_s22 = int_to_ptr.vmem [resolvable:$true] %s46_s22  ;;  %s75_s24 = int_to_ptr.vmem [resolvable:$true] %s74_s24 }
   0x9   :  { %s2092_s25 = scalar_lea.vmem %s47_s22, 512  ;;  %p2097_p1 = scmp.lt.s32.totalorder %s47_s22, %s47_s22 }
   0xa   :  { %p2093_p0 = scmp.ne.s32.totalorder %s47_s22, %s2092_s25  ;;  %p2098_p2 = scmp.lt.s32.totalorder %s2092_s25, %s2092_s25 }
   0xc   :  { %p2099_p3 = por %p2098_p2, %p2097_p1 }
   0xe   :  { %p2100_p4 = pnand %p2099_p3, %p2093_p0 }
  0x10   :  { %2103 = shalt.err (!%p2100_p4)
}
  0x11   :  { %s2278_s26 = smov 64   ;;  %s2279_s27 = smov 4  }
  0x12   :  { %52 = dma.hbm_to_vmem [thread:$0]  %s2598_s2, 512, %s47_s22, [#allocation6], %s2278_s26, %s2278_s26, %s2279_s27  }
  0x13   :  { %s2112_s30 = scalar_lea.vmem %s75_s24, 1024  ;;  %p2117_p6 = scmp.lt.s32.totalorder %s75_s24, %s75_s24 }
  0x14   :  { %p2113_p5 = scmp.ne.s32.totalorder %s75_s24, %s2112_s30  ;;  %p2118_p7 = scmp.lt.s32.totalorder %s2112_s30, %s2112_s30 }
  0x16   :  { %p2119_p8 = por %p2118_p7, %p2117_p6 }
  0x18   :  { %p2120_p9 = pnand %p2119_p8, %p2113_p5 }
  0x1a   :  { %2123 = shalt.err (!%p2120_p9)
}
  0x1b   :  { %80 = dma.hbm_to_vmem [thread:$0]  %s2602_s6, 1024, %s75_s24, [#allocation9], %s2278_s26, %s2278_s26, %s2279_s27  }
  0x1c   :  { %s2280_s18 = smov [#allocation11]   ;;  %s2281_s20 = smov [#allocation2]  }
  0x1d   :  { %s97_s19 = sshll.u32 %s2280_s18, 4  ;;  %s34_s21 = sshll.u32 %s2281_s20, 4  ;;  %s98_s19 = int_to_ptr.vmem [resolvable:$true] %s97_s19  ;;  %s35_s21 = int_to_ptr.vmem [resolvable:$true] %s34_s21 }
  0x1e   :  { %s2132_s2 = scalar_lea.vmem %s98_s19, 16  ;;  %s2136_s22 = scalar_lea.vmem %s98_s19, 32 }
  0x1f   :  { %p2133_p10 = scmp.ne.s32.totalorder %s98_s19, %s2132_s2  ;;  %p2137_p11 = scmp.lt.s32.totalorder %s98_s19, %s98_s19 }
  0x20   :  { %p2138_p12 = scmp.lt.s32.totalorder %s2136_s22, %s2132_s2 }
  0x22   :  { %p2139_p13 = por %p2138_p12, %p2137_p11 }
  0x24   :  { %p2140_p0 = pnand %p2139_p13, %p2133_p10 }
  0x26   :  { %2143 = shalt.err (!%p2140_p0)
}
  0x27   :  { %100 = dma.hbm_to_vmem [thread:$0]  %s2604_s8, 16, %s98_s19, [#allocation12]  }
  0x28   :  { %s2152_s28 = scalar_lea.vmem %s35_s21, 512  ;;  %p2157_p2 = scmp.lt.s32.totalorder %s35_s21, %s35_s21 }
  0x29   :  { %p2153_p1 = scmp.ne.s32.totalorder %s35_s21, %s2152_s28  ;;  %p2158_p3 = scmp.lt.s32.totalorder %s2152_s28, %s2152_s28 }
  0x2b   :  { %p2159_p4 = por %p2158_p3, %p2157_p2 }
  0x2d   :  { %p2160_p5 = pnand %p2159_p4, %p2153_p1 }
  0x2f   :  { %2163 = shalt.err (!%p2160_p5)
}
  0x30   :  { %40 = dma.hbm_to_vmem [thread:$0]  %s2597_s1, 512, %s35_s21, [#allocation3], %s2278_s26, %s2278_s26, %s2279_s27  }
  0x31   :  { %s2282_s29 = smov [#allocation7]   ;;  %s2283_s0 = smov [#allocation10]  }
  0x32   :  { %s60_s30 = sshll.u32 %s2282_s29, 4  ;;  %s87_s17 = sshll.u32 %s2283_s0, 4  ;;  %s61_s30 = int_to_ptr.vmem [resolvable:$true] %s60_s30  ;;  %s88_s17 = int_to_ptr.vmem [resolvable:$true] %s87_s17 }
  0x33   :  { %s2172_s8 = scalar_lea.vmem %s61_s30, 2048  ;;  %p2177_p7 = scmp.lt.s32.totalorder %s61_s30, %s61_s30 }
  0x34   :  { %p2173_p6 = scmp.ne.s32.totalorder %s61_s30, %s2172_s8  ;;  %p2178_p8 = scmp.lt.s32.totalorder %s2172_s8, %s2172_s8 }
  0x36   :  { %p2179_p9 = por %p2178_p8, %p2177_p7 }
  0x38   :  { %p2180_p10 = pnand %p2179_p9, %p2173_p6 }
  0x3a   :  { %2183 = shalt.err (!%p2180_p10)
}
  0x3b   :  { %66 = dma.hbm_to_vmem [thread:$0]  %s2600_s4, 2048, %s61_s30, [#allocation6], %s2278_s26, %s2278_s26, %s2279_s27  }
  0x3c   :  { %s2192_s1 = scalar_lea.vmem %s88_s17, 16  ;;  %s2196_s20 = scalar_lea.vmem %s88_s17, 32 }
  0x3d   :  { %p2193_p11 = scmp.ne.s32.totalorder %s88_s17, %s2192_s1  ;;  %p2197_p12 = scmp.lt.s32.totalorder %s88_s17, %s88_s17 }
  0x3e   :  { %p2198_p13 = scmp.lt.s32.totalorder %s2196_s20, %s2192_s1 }
  0x40   :  { %p2199_p0 = por %p2198_p13, %p2197_p12 }
  0x42   :  { %p2200_p1 = pnand %p2199_p0, %p2193_p11 }
  0x44   :  { %2203 = shalt.err (!%p2200_p1)
}
  0x45   :  { %90 = dma.hbm_to_vmem [thread:$0]  %s2603_s7, 16, %s88_s17, [#allocation9]  }
  0x46   :  { %s2284_s22 = smov [#allocation13]   ;;  %s2285_s25 = smov [#allocation14]  }
  0x47   :  { %s107_s23 = sshll.u32 %s2284_s22, 4  ;;  %s124_s28 = sshll.u32 %s2285_s25, 4  ;;  %s108_s23 = int_to_ptr.vmem [resolvable:$true] %s107_s23  ;;  %s125_s28 = int_to_ptr.vmem [resolvable:$true] %s124_s28 }
  0x48   :  { %s2212_s6 = scalar_lea.vmem %s108_s23, 16  ;;  %s2216_s4 = scalar_lea.vmem %s108_s23, 32 }
  0x49   :  { %p2213_p2 = scmp.ne.s32.totalorder %s108_s23, %s2212_s6  ;;  %p2217_p3 = scmp.lt.s32.totalorder %s108_s23, %s108_s23 }
  0x4a   :  { %p2218_p4 = scmp.lt.s32.totalorder %s2216_s4, %s2212_s6 }
  0x4c   :  { %p2219_p5 = por %p2218_p4, %p2217_p3 }
  0x4e   :  { %p2220_p6 = pnand %p2219_p5, %p2213_p2 }
  0x50   :  { %2223 = shalt.err (!%p2220_p6)
}
  0x51   :  { %110 = dma.hbm_to_vmem [thread:$0]  %s2605_s9, 16, %s108_s23, [#allocation12]  }
  0x52   :  { %s2232_s30 = scalar_lea.vmem %s125_s28, 1024  ;;  %p2237_p8 = scmp.lt.s32.totalorder %s125_s28, %s125_s28 }
  0x53   :  { %p2233_p7 = scmp.ne.s32.totalorder %s125_s28, %s2232_s30  ;;  %p2238_p9 = scmp.lt.s32.totalorder %s2232_s30, %s2232_s30 }
  0x55   :  { %p2239_p10 = por %p2238_p9, %p2237_p8 }
  0x57   :  { %p2240_p11 = pnand %p2239_p10, %p2233_p7 }
  0x59   :  { %2243 = shalt.err (!%p2240_p11)
}
  0x5a   :  { %130 = dma.hbm_to_vmem [thread:$0]  %s2610_s14, 1024, %s125_s28, [#allocation15], %s2278_s26, %s2278_s26, %s2279_s27  }
  0x5b   :  { %2264 = dma.done.wait [#allocation3], 512  }
  0x5c   :  { %2265 = vsyncadd [#allocation3], 4294966784 }
  0x5d   :  { %2266 = dma.done.wait [#allocation6], 2560  }
  0x5e   :  { %2267 = vsyncadd [#allocation6], 4294964736 }
  0x5f   :  { %2268 = dma.done.wait [#allocation9], 1040  }
  0x60   :  { %2269 = vsyncadd [#allocation9], 4294966256 }
  0x61   :  { %2270 = dma.done.wait [#allocation12], 32  }
  0x62   :  { %2271 = vsyncadd [#allocation12], 4294967264 }
  0x63   :  { %2272 = dma.done.wait [#allocation15], 1024  }
  0x64   :  { %2273 = vsyncadd [#allocation15], 4294966272  ;;  %s2615_s8 = sld [smem:[#allocation23_spill]]  ;;  %vm218_vm0 = vcmask 523264   ;;  %s2286_s20 = smov 32   ;;  %v2032_v4 = vld [vmem:[#allocation2] sm:$0xff]  }
  0x65   :  { %1823 = vmatprep.mubr.msk.bf16.mxu0 %vm218_vm0, %v2032_v4  ;;  %v2036_v5 = vld [vmem:[#allocation5 + $0x18] sm:$0xff]   ;;  %v2037_v6 = vld [vmem:[#allocation5 + $0x10] sm:$0xff]   ;;  %v2430_v7 = vld [vmem:[#allocation2 + $0x8] sm:$0xff]   ;;  %vm308_vm1 = vcmask 261120   ;;  %vm2288_vm2 = vmmov 0  }
  0x66   :  { %1831 = vmatprep.subr.bf16.mxu1 %v2036_v5  ;;  %v2432_v8 = vld [vmem:[#allocation2 + $0x10] sm:$0xff]   ;;  %v2438_v9 = vld [vmem:[#allocation2 + $0x18] sm:$0xff]   ;;  %v2038_v10 = vld [vmem:[#allocation5 + $0x8] sm:$0xff]  }
  0x67   :  { %1832 = vmatpush3.bf16.msra.mxu1 %v2036_v5  ;;  %v2039_v11 = vld [vmem:[#allocation5] sm:$0xff]   ;;  %v2040_v32 = vld [vmem:[#allocation7 + $0x78] sm:$0xff]   ;;  %v2042_v34 = vld [vmem:[#allocation7 + $0x70] sm:$0xff]  }
  0x68   :  { %1833 = vmatprep.subr.bf16.mxu1 %v2037_v6  ;;  %v2041_v33 = vld [vmem:[#allocation7 + $0x38] sm:$0xff]   ;;  %v2043_v35 = vld [vmem:[#allocation7 + $0x30] sm:$0xff]   ;;  %v2044_v36 = vld [vmem:[#allocation7 + $0x68] sm:$0xff]  }
  0x69   :  { %v2045_v37 = vld [vmem:[#allocation7 + $0x28] sm:$0xff]   ;;  %v2046_v38 = vld [vmem:[#allocation7 + $0x60] sm:$0xff]   ;;  %v2048_v40 = vld [vmem:[#allocation7 + $0x58] sm:$0xff]  }
  0x6a   :  { %v2028_v0 = vld [vmem:[%s2615_s8 + $0x18] sm:$0xff]   ;;  %v2029_v1 = vld [vmem:[%s2615_s8 + $0x10] sm:$0xff]   ;;  %v2030_v2 = vld [vmem:[%s2615_s8 + $0x8] sm:$0xff]  }
  0x6b   :  { %1815 = vmatprep.subr.bf16.mxu0 %v2028_v0  ;;  %v2031_v3 = vld [vmem:[%s2615_s8] sm:$0xff]   ;;  %304 = vrot.lane.b32.xlu1 %v2029_v1, %s2286_s20  ;;  %v2049_v41 = vld [vmem:[#allocation7 + $0x18] sm:$0xff]   ;;  %v2050_v42 = vld [vmem:[#allocation7 + $0x50] sm:$0xff]  }
  0x6c   :  { %1816 = vmatpush3.bf16.msra.mxu0 %v2028_v0  ;;  %300 = vrot.lane.b32.xlu0 %v2031_v3, %s2286_s20  ;;  %v2047_v39 = vld [vmem:[#allocation7 + $0x20] sm:$0xff]   ;;  %v2051_v43 = vld [vmem:[#allocation7 + $0x10] sm:$0xff]  }
  0x6d   :  { %1817 = vmatprep.subr.bf16.mxu0 %v2029_v1  ;;  %1834 = vmatpush3.bf16.msra.mxu1 %v2037_v6  ;;  %v1614_v46 = vld [vmem:[%s2599_s3] ss:$0 sm:$0xff] }
  0x6e   :  { %1835 = vmatprep.subr.bf16.mxu1 %v2038_v10 }
  0x6f   :  { %306 = vrot.lane.b32.xlu1 %v2028_v0, %s2286_s20 }
  0x70   :  { %1818 = vmatpush3.bf16.msra.mxu0 %v2029_v1  ;;  %302 = vrot.lane.b32.xlu0 %v2030_v2, %s2286_s20  ;;  %s2290_s20 = smov [#allocation16]  }
  0x71   :  { %1819 = vmatprep.subr.bf16.mxu0 %v2030_v2  ;;  %1836 = vmatpush3.bf16.msra.mxu1 %v2038_v10 }
  0x72   :  { %1837 = vmatprep.subr.bf16.mxu1 %v2039_v11 }
  0x74   :  { %1820 = vmatpush3.bf16.msra.mxu0 %v2030_v2 }
  0x75   :  { %1821 = vmatprep.subr.bf16.mxu0 %v2031_v3  ;;  %1838 = vmatpush3.bf16.msra.mxu1 %v2039_v11 }
  0x76   :  { %1703 = vmatprep.subr.bf16.mxu1 %v2040_v32  ;;  %v2063_v32 = vld [vmem:[#allocation8] sm:$0xff]  }
  0x78   :  { %1822 = vmatpush3.bf16.msra.mxu0 %v2031_v3 }
  0x7b   :  { %1824 = vmatmul.mubr.msk.bf16.vlgmr.msra.gmra.mxu0 %vm218_vm0, %v2430_v7 }
  0x7c   :  { %1827 = vmatprep.mubr.msk.bf16.mxu0 %vm218_vm0, %v2432_v8 }
  0x83   :  { %1828 = vmatmul.mubr.msk.bf16.gmra.mxu0 %vm218_vm0, %v2438_v9 }
  0x84   :  { %1855 = vmatprep.mubr.msk.bf16.mxu0 %vm218_vm0, %v2032_v4 }
  0xdd   :  { %v305_v21 = vpop.permute.xlu1 %304 }
  0xde   :  { %v301_v13 = vpop.permute.xlu0 %300 }
  0xe1   :  { %v307_v28 = vpop.permute.xlu1 %306 }
  0xe2   :  { %v303_v18 = vpop.permute.xlu0 %302 }
 0x13b   :  { %v1825_v12 = vpop.f32.mrf.mxu0 }
 0x13d   :  { %v265_v14 = vpop.f32.mrf.mxu0 }
 0x13f   :  { %v1826_v15 = vpop.f32.mrf.mxu0 }
 0x140   :  { %v297_v16 = vpack.c.bf16 %v1826_v15, %v1825_v12  ;;  %v2052_v12 = vld [vmem:[#allocation7 + $0x48] sm:$0xff]   ;;  %v2055_v15 = vld [vmem:[#allocation7] sm:$0xff]  }
 0x141   :  { %v268_v17 = vpop.f32.mrf.mxu0 }
 0x142   :  { %v296_v19 = vpack.c.bf16 %v268_v17, %v265_v14  ;;  %v314_v23 = vsel %vm308_vm1, %v297_v16, %v303_v18  ;;  %v2054_v14 = vld [vmem:[#allocation7 + $0x40] sm:$0xff]   ;;  %v2056_v16 = vld [vmem:[#allocation8 + $0x38] sm:$0xff]  }
 0x143   :  { %v1829_v20 = vpop.f32.mrf.mxu0 }
 0x144   :  { %v311_v22 = vsel %vm308_vm1, %v296_v19, %v301_v13  ;;  %v2053_v13 = vld [vmem:[#allocation7 + $0x8] sm:$0xff]  }
 0x145   :  { %v281_v24 = vpop.f32.mrf.mxu0  ;;  %1839 = vmatprep.mubr.msk.bf16.mxu1 %vm218_vm0, %v311_v22 }
 0x146   :  { %1840 = vmatmul.mubr.msk.bf16.vlgmr.msra.gmra.mxu1 %vm218_vm0, %v314_v23 }
 0x147   :  { %v1830_v25 = vpop.f32.mrf.mxu0  ;;  %1704 = vmatpush3.bf16.msra.mxu1 %v2041_v33 }
 0x148   :  { %v299_v26 = vpack.c.bf16 %v1830_v25, %v1829_v20  ;;  %1705 = vmatprep.subr.bf16.mxu1 %v2042_v34 }
 0x149   :  { %v284_v27 = vpop.f32.mrf.mxu0 }
 0x14a   :  { %v298_v29 = vpack.c.bf16 %v284_v27, %v281_v24  ;;  %v320_v31 = vsel %vm308_vm1, %v299_v26, %v307_v28  ;;  %v2059_v28 = vld [vmem:[#allocation8 + $0x20] sm:$0xff]  }
 0x14b   :  { %1706 = vmatpush3.bf16.msra.mxu1 %v2043_v35 }
 0x14c   :  { %v317_v30 = vsel %vm308_vm1, %v298_v29, %v305_v21  ;;  %1707 = vmatprep.subr.bf16.mxu1 %v2044_v36  ;;  %v2057_v21 = vld [vmem:[#allocation8 + $0x30] sm:$0xff]   ;;  %v2060_v29 = vld [vmem:[#allocation8 + $0x18] sm:$0xff]   ;;  %v1627_v36 = vld [vmem:[%s2601_s5] ss:$0 sm:$0xff] }
 0x14d   :  { %1843 = vmatprep.mubr.msk.bf16.mxu1 %vm218_vm0, %v317_v30  ;;  %v2061_v30 = vld [vmem:[#allocation8 + $0x10] sm:$0xff]  }
 0x14e   :  { %1844 = vmatmul.mubr.msk.bf16.gmra.mxu1 %vm218_vm0, %v320_v31  ;;  %v2062_v31 = vld [vmem:[#allocation8 + $0x8] sm:$0xff]  }
 0x14f   :  { %1708 = vmatpush3.bf16.msra.mxu1 %v2045_v37 }
 0x150   :  { %1709 = vmatprep.subr.bf16.mxu1 %v2046_v38 }
 0x153   :  { %1710 = vmatpush3.bf16.msra.mxu1 %v2047_v39 }
 0x154   :  { %1711 = vmatprep.subr.bf16.mxu1 %v2048_v40 }
 0x157   :  { %1712 = vmatpush3.bf16.msra.mxu1 %v2049_v41 }
 0x158   :  { %1713 = vmatprep.subr.bf16.mxu1 %v2050_v42 }
 0x15b   :  { %1714 = vmatpush3.bf16.msra.mxu1 %v2051_v43 }
 0x15c   :  { %1715 = vmatprep.subr.bf16.mxu1 %v2052_v12 }
 0x15f   :  { %1716 = vmatpush3.bf16.msra.mxu1 %v2053_v13 }
 0x160   :  { %1717 = vmatprep.subr.bf16.mxu1 %v2054_v14 }
 0x163   :  { %1718 = vmatpush3.bf16.msra.mxu1 %v2055_v15 }
 0x164   :  { %1863 = vmatprep.subr.bf16.mxu1 %v2056_v16 }
 0x206   :  { %v1841_v44 = vpop.f32.mrf.mxu1 }
 0x207   :  { %v411_v1 = vadd.f32 %v1841_v44, %v1614_v46 }
 0x208   :  { %v402_v45 = vpop.f32.mrf.mxu1 }
 0x209   :  { %v403_v48 = vadd.f32 %v1614_v46, %v402_v45  ;;  %v435_v10 = vmax.f32 %v411_v1, 0.0 }
 0x20a   :  { %v1842_v47 = vpop.f32.mrf.mxu1 }
 0x20b   :  { %v433_v52 = vmax.f32 %v403_v48, 0.0  ;;  %v414_v61 = vadd.f32 %v1842_v47, %v1614_v46 }
 0x20c   :  { %v405_v49 = vpop.f32.mrf.mxu1 }
 0x20d   :  { %v406_v50 = vadd.f32 %v1614_v46, %v405_v49  ;;  %v436_v5 = vmax.f32 %v414_v61, 0.0 }
 0x20e   :  { %v1845_v51 = vpop.f32.mrf.mxu1 }
 0x20f   :  { %v434_v53 = vmax.f32 %v406_v50, 0.0  ;;  %v427_v56 = vadd.f32 %v1845_v51, %v1614_v46  ;;  %v442_v11 = vpack.c.bf16 %v436_v5, %v435_v10 }
 0x210   :  { %v418_v54 = vpop.f32.mrf.mxu1 }
 0x211   :  { %v441_v55 = vpack.c.bf16 %v434_v53, %v433_v52  ;;  %v419_v58 = vadd.f32 %v1614_v46, %v418_v54  ;;  %v439_v62 = vmax.f32 %v427_v56, 0.0 }
 0x212   :  { %v1846_v57 = vpop.f32.mrf.mxu1 }
 0x213   :  { %v430_v59 = vadd.f32 %v1846_v57, %v1614_v46  ;;  %681 = vmatprep.mubr.bf16.mxu1 %v441_v55  ;;  %v437_v2 = vmax.f32 %v419_v58, 0.0 }
 0x214   :  { %v421_v60 = vpop.f32.mrf.mxu1 }
 0x215   :  { %v440_v63 = vmax.f32 %v430_v59, 0.0  ;;  %v422_v0 = vadd.f32 %v1614_v46, %v421_v60 }
 0x217   :  { %v444_v3 = vpack.c.bf16 %v440_v63, %v439_v62  ;;  %v438_v4 = vmax.f32 %v422_v0, 0.0 }
 0x219   :  { %v443_v6 = vpack.c.bf16 %v438_v4, %v437_v2  ;;  %1847 = vmatprep.subr.bf16.mxu0 %v444_v3 }
 0x21a   :  { %1848 = vmatpush3.bf16.msra.mxu0 %v444_v3 }
 0x21b   :  { %1849 = vmatprep.subr.bf16.mxu0 %v443_v6 }
 0x21e   :  { %1850 = vmatpush3.bf16.msra.mxu0 %v443_v6 }
 0x21f   :  { %1851 = vmatprep.subr.bf16.mxu0 %v442_v11 }
 0x222   :  { %1852 = vmatpush3.bf16.msra.mxu0 %v442_v11 }
 0x223   :  { %1853 = vmatprep.subr.bf16.mxu0 %v441_v55 }
 0x226   :  { %1854 = vmatpush3.bf16.msra.mxu0 %v441_v55 }
 0x229   :  { %1856 = vmatmul.mubr.msk.bf16.vlgmr.msra.gmra.mxu0 %vm218_vm0, %v2430_v7 }
 0x22a   :  { %1859 = vmatprep.mubr.msk.bf16.mxu0 %vm218_vm0, %v2432_v8 }
 0x231   :  { %1860 = vmatmul.mubr.msk.bf16.gmra.mxu0 %vm218_vm0, %v2438_v9  ;;  %v2058_v9 = vld [vmem:[#allocation8 + $0x28] sm:$0xff]  }
 0x2e9   :  { %v1857_v17 = vpop.f32.mrf.mxu0 }
 0x2eb   :  { %v479_v18 = vpop.f32.mrf.mxu0 }
 0x2ed   :  { %v1858_v19 = vpop.f32.mrf.mxu0 }
 0x2ee   :  { %v511_v23 = vpack.c.bf16 %v1858_v19, %v1857_v17  ;;  %v2287_v17 = vmov 0.0  }
 0x2ef   :  { %v482_v7 = vpop.f32.mrf.mxu0  ;;  %1887 = vmatprep.subr.mxu0 %v2287_v17  ;;  %1903 = vmatprep.mubr.msk.f32.mxu0 %vm2288_vm2, %v2287_v17 }
 0x2f0   :  { %v510_v20 = vpack.c.bf16 %v482_v7, %v479_v18 }
 0x2f1   :  { %v1861_v8 = vpop.f32.mrf.mxu0 }
 0x2f2   :  { %682 = vmatmul.mubr.bf16.vlgmr.msra.gmra.mxu1 %v510_v20 }
 0x2f3   :  { %689 = vmatprep.mubr.bf16.mxu1 %v442_v11  ;;  %1864 = vmatpush3.bf16.msra.mxu1 %v2056_v16  ;;  %v495_v22 = vpop.f32.mrf.mxu0 }
 0x2f4   :  { %1865 = vmatprep.subr.bf16.mxu1 %v2057_v21 }
 0x2f5   :  { %v1862_v24 = vpop.f32.mrf.mxu0 }
 0x2f6   :  { %v513_v27 = vpack.c.bf16 %v1862_v24, %v1861_v8 }
 0x2f7   :  { %1866 = vmatpush3.bf16.msra.mxu1 %v2057_v21  ;;  %v498_v25 = vpop.f32.mrf.mxu0 }
 0x2f8   :  { %1867 = vmatprep.subr.bf16.mxu1 %v2058_v9  ;;  %v512_v26 = vpack.c.bf16 %v498_v25, %v495_v22 }
 0x2fa   :  { %690 = vmatmul.mubr.bf16.gmra.mxu1 %v511_v23 }
 0x2fb   :  { %697 = vmatprep.mubr.bf16.mxu1 %v443_v6  ;;  %1868 = vmatpush3.bf16.msra.mxu1 %v2058_v9  ;;  %v1644_v9 = vld [vmem:[#allocation10] ss:$0 sm:$0xff] }
 0x2fc   :  { %1869 = vmatprep.subr.bf16.mxu1 %v2059_v28 }
 0x2ff   :  { %1870 = vmatpush3.bf16.msra.mxu1 %v2059_v28 }
 0x300   :  { %1871 = vmatprep.subr.bf16.mxu1 %v2060_v29 }
 0x302   :  { %698 = vmatmul.mubr.bf16.gmra.mxu1 %v512_v26 }
 0x303   :  { %705 = vmatprep.mubr.bf16.mxu1 %v444_v3  ;;  %1872 = vmatpush3.bf16.msra.mxu1 %v2060_v29 }
 0x304   :  { %1873 = vmatprep.subr.bf16.mxu1 %v2061_v30 }
 0x307   :  { %1874 = vmatpush3.bf16.msra.mxu1 %v2061_v30 }
 0x308   :  { %1875 = vmatprep.subr.bf16.mxu1 %v2062_v31 }
 0x30a   :  { %706 = vmatmul.mubr.bf16.gmra.mxu1 %v513_v27 }
 0x30b   :  { %1876 = vmatpush3.bf16.msra.mxu1 %v2062_v31 }
 0x30c   :  { %1877 = vmatprep.subr.bf16.mxu1 %v2063_v32 }
 0x30f   :  { %1878 = vmatpush3.bf16.msra.mxu1 %v2063_v32  ;;  %v2289_v32 = vmov 1.0  }
 0x310   :  { %1906 = vmatprep.subr.mxu1 %v2287_v17 }
 0x3b2   :  { %v1719_v33 = vpop.f32.mrf.mxu1 }
 0x3b4   :  { %v1720_v34 = vpop.f32.mrf.mxu1 }
 0x3b5   :  { %v1721_v35 = vadd.f32 %v1720_v34, %v1719_v33  ;;  %v938_v33 = vlaneseq }
 0x3b6   :  { %v1722_v37 = vpop.f32.mrf.mxu1 }
 0x3b7   :  { %v684_v39 = vadd.f32 %v1721_v35, %v1627_v36  ;;  %v939_v34 = vshrl.u32 %v938_v33, 7 }
 0x3b8   :  { %v1723_v38 = vpop.f32.mrf.mxu1 }
 0x3b9   :  { %v1724_v40 = vadd.f32 %v1723_v38, %v1722_v37  ;;  %v714_v44 = vmax.f32 %v684_v39, 0.0  ;;  %v2478_v35 = vsub.s32 0, %v939_v34 }
 0x3ba   :  { %v1725_v41 = vpop.f32.mrf.mxu1 }
 0x3bb   :  { %v687_v42 = vadd.f32 %v1724_v40, %v1627_v36 }
 0x3bc   :  { %v1726_v43 = vpop.f32.mrf.mxu1 }
 0x3bd   :  { %v715_v45 = vmax.f32 %v687_v42, 0.0  ;;  %v1727_v46 = vadd.f32 %v1726_v43, %v1725_v41 }
 0x3be   :  { %v1728_v47 = vpop.f32.mrf.mxu1 }
 0x3bf   :  { %v722_v48 = vpack.c.bf16 %v715_v45, %v714_v44  ;;  %v692_v50 = vadd.f32 %v1727_v46, %v1627_v36 }
 0x3c0   :  { %v1729_v49 = vpop.f32.mrf.mxu1 }
 0x3c1   :  { %v1730_v51 = vadd.f32 %v1729_v49, %v1728_v47  ;;  %1879 = vmatprep.mubr.bf16.mxu1 %v722_v48  ;;  %v716_v55 = vmax.f32 %v692_v50, 0.0 }
 0x3c2   :  { %v1731_v52 = vpop.f32.mrf.mxu1 }
 0x3c3   :  { %v695_v53 = vadd.f32 %v1730_v51, %v1627_v36 }
 0x3c4   :  { %v1732_v54 = vpop.f32.mrf.mxu1 }
 0x3c5   :  { %v717_v56 = vmax.f32 %v695_v53, 0.0  ;;  %v1733_v57 = vadd.f32 %v1732_v54, %v1731_v52 }
 0x3c6   :  { %v1734_v58 = vpop.f32.mrf.mxu1 }
 0x3c7   :  { %v723_v59 = vpack.c.bf16 %v717_v56, %v716_v55  ;;  %v700_v61 = vadd.f32 %v1733_v57, %v1627_v36  ;;  %v2064_v56 = vld [vmem:[%s2606_s10 + $0x38] sm:$0xff]   ;;  %v2065_v57 = vld [vmem:[%s2606_s10 + $0x30] sm:$0xff]  }
 0x3c8   :  { %v1735_v60 = vpop.f32.mrf.mxu1 }
 0x3c9   :  { %v1736_v62 = vadd.f32 %v1735_v60, %v1734_v58  ;;  %1880 = vmatmul.mubr.bf16.vlgmr.msra.gmra.mxu1 %v723_v59  ;;  %v718_v2 = vmax.f32 %v700_v61, 0.0  ;;  %v2066_v58 = vld [vmem:[%s2606_s10 + $0x28] sm:$0xff]   ;;  %v2067_v59 = vld [vmem:[%s2606_s10 + $0x20] sm:$0xff]   ;;  %v2068_v60 = vld [vmem:[%s2606_s10 + $0x18] sm:$0xff]  }
 0x3ca   :  { %v1737_v63 = vpop.f32.mrf.mxu1  ;;  %v2069_v61 = vld [vmem:[%s2606_s10 + $0x10] sm:$0xff]  }
 0x3cb   :  { %v703_v0 = vadd.f32 %v1736_v62, %v1627_v36  ;;  %v2070_v62 = vld [vmem:[%s2606_s10 + $0x8] sm:$0xff]  }
 0x3cc   :  { %v1738_v1 = vpop.f32.mrf.mxu1 }
 0x3cd   :  { %v719_v3 = vmax.f32 %v703_v0, 0.0  ;;  %v1739_v4 = vadd.f32 %v1738_v1, %v1737_v63  ;;  %v2071_v63 = vld [vmem:[%s2606_s10] sm:$0xff]  }
 0x3ce   :  { %v1740_v5 = vpop.f32.mrf.mxu1 }
 0x3cf   :  { %v724_v6 = vpack.c.bf16 %v719_v3, %v718_v2  ;;  %v708_v11 = vadd.f32 %v1739_v4, %v1627_v36 }
 0x3d0   :  { %v1741_v10 = vpop.f32.mrf.mxu1 }
 0x3d1   :  { %v1742_v12 = vadd.f32 %v1741_v10, %v1740_v5  ;;  %1883 = vmatprep.mubr.bf16.mxu1 %v724_v6  ;;  %v720_v14 = vmax.f32 %v708_v11, 0.0  ;;  %v1655_v6 = vld [vmem:[#allocation11] ss:$0 sm:$0xff] }
 0x3d3   :  { %v711_v13 = vadd.f32 %v1742_v12, %v1627_v36 }
 0x3d5   :  { %v721_v15 = vmax.f32 %v711_v13, 0.0 }
 0x3d7   :  { %v725_v16 = vpack.c.bf16 %v721_v15, %v720_v14  ;;  %v1656_v14 = vld [vmem:[#allocation13] ss:$0 sm:$0xff] }
 0x3d9   :  { %1884 = vmatmul.mubr.bf16.gmra.mxu1 %v725_v16 }
 0x3da   :  { %1922 = vmatprep.mubr.msk.f32.mxu1 %vm2288_vm2, %v2287_v17 }
 0x489   :  { %v1881_v18 = vpop.f32.mrf.mxu1 }
 0x48a   :  { %v840_v29 = vadd.f32 %v1881_v18, %v1644_v9 }
 0x48b   :  { %v831_v19 = vpop.f32.mrf.mxu1 }
 0x48c   :  { %v832_v31 = vadd.f32 %v1644_v9, %v831_v19 }
 0x48d   :  { %v1882_v7 = vpop.f32.mrf.mxu1 }
 0x48e   :  { %v843_v28 = vadd.f32 %v1882_v7, %v1644_v9 }
 0x48f   :  { %v834_v20 = vpop.f32.mrf.mxu1 }
 0x490   :  { %v835_v30 = vadd.f32 %v1644_v9, %v834_v20 }
 0x499   :  { %v1885_v21 = vpop.f32.mrf.mxu1 }
 0x49a   :  { %v856_v25 = vadd.f32 %v1885_v21, %v1644_v9 }
 0x49b   :  { %v847_v8 = vpop.f32.mrf.mxu1 }
 0x49c   :  { %v848_v27 = vadd.f32 %v1644_v9, %v847_v8 }
 0x49d   :  { %v1886_v22 = vpop.f32.mrf.mxu1 }
 0x49e   :  { %v859_v23 = vadd.f32 %v1886_v22, %v1644_v9 }
 0x49f   :  { %v850_v24 = vpop.f32.mrf.mxu1 }
 0x4a0   :  { %1888 = vmatpush3.msra.mxu0 %v859_v23  ;;  %v851_v26 = vadd.f32 %v1644_v9, %v850_v24 }
 0x4a1   :  { %1889 = vmatprep.subr.mxu0 %v2287_v17 }
 0x4a2   :  { %1890 = vmatpush3.msra.mxu0 %v856_v25 }
 0x4a3   :  { %1891 = vmatprep.subr.mxu0 %v2287_v17 }
 0x4a4   :  { %1892 = vmatpush3.msra.mxu0 %v851_v26 }
 0x4a5   :  { %1893 = vmatprep.subr.mxu0 %v2287_v17 }
 0x4a6   :  { %1894 = vmatpush3.msra.mxu0 %v848_v27 }
 0x4a7   :  { %1895 = vmatprep.subr.mxu0 %v2287_v17 }
 0x4a8   :  { %1896 = vmatpush3.msra.mxu0 %v843_v28 }
 0x4a9   :  { %1897 = vmatprep.subr.mxu0 %v2287_v17 }
 0x4aa   :  { %1898 = vmatpush3.msra.mxu0 %v840_v29 }
 0x4ab   :  { %1899 = vmatprep.subr.mxu0 %v2287_v17 }
 0x4ac   :  { %1900 = vmatpush3.msra.mxu0 %v835_v30 }
 0x4ad   :  { %1901 = vmatprep.subr.mxu0 %v2287_v17 }
 0x4ae   :  { %1902 = vmatpush3.msra.mxu0 %v832_v31 }
 0x4af   :  { %1904 = vmatmul.mubr.msk.f32.vlgmr.msra.gmra.mxu0 %vm218_vm0, %v2289_v32  ;;  %1925 = vmatprep.subr.bf16.mxu0 %v2064_v56 }
 0x4b0   :  { %1926 = vmatpush3.bf16.msra.mxu0 %v2064_v56 }
 0x4b1   :  { %1927 = vmatprep.subr.bf16.mxu0 %v2065_v57 }
 0x4b4   :  { %1928 = vmatpush3.bf16.msra.mxu0 %v2065_v57 }
 0x4b5   :  { %1929 = vmatprep.subr.bf16.mxu0 %v2066_v58 }
 0x4b8   :  { %1930 = vmatpush3.bf16.msra.mxu0 %v2066_v58 }
 0x4b9   :  { %1931 = vmatprep.subr.bf16.mxu0 %v2067_v59 }
 0x4bc   :  { %1932 = vmatpush3.bf16.msra.mxu0 %v2067_v59 }
 0x4bd   :  { %1933 = vmatprep.subr.bf16.mxu0 %v2068_v60 }
 0x4c0   :  { %1934 = vmatpush3.bf16.msra.mxu0 %v2068_v60 }
 0x4c1   :  { %1935 = vmatprep.subr.bf16.mxu0 %v2069_v61 }
 0x4c4   :  { %1936 = vmatpush3.bf16.msra.mxu0 %v2069_v61 }
 0x4c5   :  { %1937 = vmatprep.subr.bf16.mxu0 %v2070_v62 }
 0x4c8   :  { %1938 = vmatpush3.bf16.msra.mxu0 %v2070_v62 }
 0x4c9   :  { %1939 = vmatprep.subr.bf16.mxu0 %v2071_v63 }
 0x4cc   :  { %1940 = vmatpush3.bf16.msra.mxu0 %v2071_v63 }
 0x56f   :  { %v933_v36 = vpop.f32.mrf.mxu0 }
 0x570   :  { %v937_v37 = vmul.f32 0.015625, %v933_v36 }
 0x571   :  { %v1905_v38 = vpop.f32.mrf.mxu0 }
 0x572   :  { %v941_v39 = vrot.slane %v937_v37, %v2478_v35 }
 0x574   :  { %v2481_v40 = vsub.f32 %v859_v23, %v941_v39  ;;  %v2483_v41 = vsub.f32 %v856_v25, %v941_v39  ;;  %v2487_v43 = vsub.f32 %v851_v26, %v941_v39  ;;  %v2491_v45 = vsub.f32 %v848_v27, %v941_v39 }
 0x575   :  { %v945_v47 = vsub.f32 %v843_v28, %v941_v39  ;;  %v944_v49 = vsub.f32 %v840_v29, %v941_v39  ;;  %v943_v51 = vsub.f32 %v835_v30, %v941_v39  ;;  %v942_v53 = vsub.f32 %v832_v31, %v941_v39 }
 0x576   :  { %v957_v42 = vmul.f32 %v2481_v40, %v2481_v40  ;;  %v956_v44 = vmul.f32 %v2483_v41, %v2483_v41  ;;  %v955_v46 = vmul.f32 %v2487_v43, %v2487_v43  ;;  %v954_v48 = vmul.f32 %v2491_v45, %v2491_v45 }
 0x577   :  { %v953_v50 = vmul.f32 %v945_v47, %v945_v47  ;;  %v952_v52 = vmul.f32 %v944_v49, %v944_v49  ;;  %v951_v54 = vmul.f32 %v943_v51, %v943_v51  ;;  %v950_v55 = vmul.f32 %v942_v53, %v942_v53 }
 0x578   :  { %1907 = vmatpush3.msra.mxu1 %v957_v42 }
 0x579   :  { %1908 = vmatprep.subr.mxu1 %v2287_v17 }
 0x57a   :  { %1909 = vmatpush3.msra.mxu1 %v956_v44 }
 0x57b   :  { %1910 = vmatprep.subr.mxu1 %v2287_v17 }
 0x57c   :  { %1911 = vmatpush3.msra.mxu1 %v955_v46 }
 0x57d   :  { %1912 = vmatprep.subr.mxu1 %v2287_v17 }
 0x57e   :  { %1913 = vmatpush3.msra.mxu1 %v954_v48 }
 0x57f   :  { %1914 = vmatprep.subr.mxu1 %v2287_v17 }
 0x580   :  { %1915 = vmatpush3.msra.mxu1 %v953_v50 }
 0x581   :  { %1916 = vmatprep.subr.mxu1 %v2287_v17 }
 0x582   :  { %1917 = vmatpush3.msra.mxu1 %v952_v52 }
 0x583   :  { %1918 = vmatprep.subr.mxu1 %v2287_v17 }
 0x584   :  { %1919 = vmatpush3.msra.mxu1 %v951_v54 }
 0x585   :  { %1920 = vmatprep.subr.mxu1 %v2287_v17 }
 0x586   :  { %1921 = vmatpush3.msra.mxu1 %v950_v55 }
 0x587   :  { %1923 = vmatmul.mubr.msk.f32.vlgmr.msra.gmra.mxu1 %vm218_vm0, %v2289_v32  ;;  %1949 = vmatprep.subr.mxu1 %v2287_v17 }
 0x588   :  { %1965 = vmatprep.mubr.msk.f32.mxu1 %vm2288_vm2, %v2287_v17 }
 0x647   :  { %v1024_v0 = vpop.f32.mrf.mxu1 }
 0x648   :  { %v1028_v1 = vmul.f32 0.015625, %v1024_v0 }
 0x649   :  { %v1924_v2 = vpop.f32.mrf.mxu1 }
 0x64a   :  { %v1029_v3 = vadd.f32 1e-05, %v1028_v1 }
 0x64c   :  { %2080 = vrsqrt.f32 %v1029_v3 }
 0x659   :  { %v2081_v4 = vpop.eup %2080 }
 0x65a   :  { %v1034_v5 = vrot.slane %v2081_v4, %v2478_v35 }
 0x65c   :  { %v1035_v10 = vmul.f32 %v1034_v5, %v942_v53  ;;  %v1036_v11 = vmul.f32 %v1034_v5, %v943_v51  ;;  %v1037_v12 = vmul.f32 %v1034_v5, %v944_v49  ;;  %v1038_v13 = vmul.f32 %v1034_v5, %v945_v47  ;;  %v1657_v53 = vld [vmem:[%s2607_s11] ss:$0 sm:$0xff] }
 0x65d   :  { %v1039_v15 = vmul.f32 %v1034_v5, %v2491_v45  ;;  %v1040_v16 = vmul.f32 %v1034_v5, %v2487_v43  ;;  %v1041_v18 = vmul.f32 %v1034_v5, %v2483_v41  ;;  %v1042_v19 = vmul.f32 %v1034_v5, %v2481_v40 }
 0x65e   :  { %v1049_v7 = vmul.f32 %v1655_v6, %v1035_v10  ;;  %v1050_v20 = vmul.f32 %v1655_v6, %v1036_v11  ;;  %v1051_v21 = vmul.f32 %v1655_v6, %v1037_v12  ;;  %v1052_v8 = vmul.f32 %v1655_v6, %v1038_v13 }
 0x65f   :  { %v1053_v9 = vmul.f32 %v1655_v6, %v1039_v15  ;;  %v1054_v22 = vmul.f32 %v1655_v6, %v1040_v16  ;;  %v1055_v29 = vmul.f32 %v1655_v6, %v1041_v18  ;;  %v1056_v30 = vmul.f32 %v1655_v6, %v1042_v19 }
 0x660   :  { %v1063_v23 = vadd.f32 %v1656_v14, %v1049_v7  ;;  %v1064_v24 = vadd.f32 %v1656_v14, %v1050_v20  ;;  %v1065_v25 = vadd.f32 %v1656_v14, %v1051_v21  ;;  %v1066_v26 = vadd.f32 %v1656_v14, %v1052_v8 }
 0x661   :  { %v1067_v27 = vadd.f32 %v1656_v14, %v1053_v9  ;;  %v1068_v28 = vadd.f32 %v1656_v14, %v1054_v22  ;;  %v1069_v41 = vadd.f32 %v1656_v14, %v1055_v29  ;;  %v1070_v42 = vadd.f32 %v1656_v14, %v1056_v30  ;;  %v2072_v9 = vld [vmem:[#allocation14 + $0x38] sm:$0xff]   ;;  %v2073_v22 = vld [vmem:[#allocation14 + $0x30] sm:$0xff]  }
 0x662   :  { %v1071_v31 = vmax.f32 %v1063_v23, 0.0  ;;  %v1072_v33 = vmax.f32 %v1064_v24, 0.0  ;;  %v1073_v34 = vmax.f32 %v1065_v25, 0.0  ;;  %v1074_v36 = vmax.f32 %v1066_v26, 0.0  ;;  %1987 = vmatprep.subr.bf16.mxu0 %v2072_v9  ;;  %v2074_v23 = vld [vmem:[#allocation14 + $0x28] sm:$0xff]   ;;  %v2075_v24 = vld [vmem:[#allocation14 + $0x20] sm:$0xff]  }
 0x663   :  { %v1075_v37 = vmax.f32 %v1067_v27, 0.0  ;;  %v1076_v38 = vmax.f32 %v1068_v28, 0.0  ;;  %v1077_v44 = vmax.f32 %v1069_v41, 0.0  ;;  %v1078_v45 = vmax.f32 %v1070_v42, 0.0  ;;  %v2076_v25 = vld [vmem:[#allocation14 + $0x18] sm:$0xff]   ;;  %v2078_v26 = vld [vmem:[#allocation14 + $0x8] sm:$0xff]  }
 0x664   :  { %v1079_v39 = vpack.c.bf16 %v1072_v33, %v1071_v31  ;;  %v1080_v40 = vpack.c.bf16 %v1074_v36, %v1073_v34  ;;  %v1668_v34 = vld [vmem:[%s2608_s12] ss:$0 sm:$0xff] }
 0x665   :  { %v1081_v43 = vpack.c.bf16 %v1076_v38, %v1075_v37  ;;  %v1082_v46 = vpack.c.bf16 %v1078_v45, %v1077_v44 }
 0x666   :  { %1941 = vmatprep.mubr.bf16.mxu0 %v1079_v39 }
 0x667   :  { %1942 = vmatmul.mubr.bf16.vlgmr.msra.gmra.mxu0 %v1080_v40  ;;  %v1669_v40 = vld [vmem:[%s2609_s13] ss:$0 sm:$0xff] }
 0x668   :  { %1945 = vmatprep.mubr.bf16.mxu0 %v1081_v43  ;;  %1988 = vmatpush3.bf16.msra.mxu0 %v2072_v9 }
 0x669   :  { %1989 = vmatprep.subr.bf16.mxu0 %v2073_v22 }
 0x66c   :  { %1990 = vmatpush3.bf16.msra.mxu0 %v2073_v22 }
 0x66d   :  { %1991 = vmatprep.subr.bf16.mxu0 %v2074_v23 }
 0x66f   :  { %1946 = vmatmul.mubr.bf16.gmra.mxu0 %v1082_v46 }
 0x670   :  { %1992 = vmatpush3.bf16.msra.mxu0 %v2074_v23 }
 0x671   :  { %1993 = vmatprep.subr.bf16.mxu0 %v2075_v24 }
 0x674   :  { %1994 = vmatpush3.bf16.msra.mxu0 %v2075_v24 }
 0x675   :  { %1995 = vmatprep.subr.bf16.mxu0 %v2076_v25 }
 0x678   :  { %1996 = vmatpush3.bf16.msra.mxu0 %v2076_v25 }
 0x727   :  { %v1943_v47 = vpop.f32.mrf.mxu0 }
 0x728   :  { %v1197_v61 = vadd.f32 %v1943_v47, %v1657_v53 }
 0x729   :  { %v1188_v48 = vpop.f32.mrf.mxu0 }
 0x72a   :  { %v1189_v63 = vadd.f32 %v1657_v53, %v1188_v48 }
 0x72b   :  { %v1944_v49 = vpop.f32.mrf.mxu0 }
 0x72c   :  { %v1200_v60 = vadd.f32 %v1944_v49, %v1657_v53 }
 0x72d   :  { %v1191_v50 = vpop.f32.mrf.mxu0 }
 0x72e   :  { %v1192_v62 = vadd.f32 %v1657_v53, %v1191_v50 }
 0x72f   :  { %v1947_v51 = vpop.f32.mrf.mxu0 }
 0x730   :  { %v1213_v57 = vadd.f32 %v1947_v51, %v1657_v53 }
 0x731   :  { %v1204_v52 = vpop.f32.mrf.mxu0 }
 0x732   :  { %v1205_v59 = vadd.f32 %v1657_v53, %v1204_v52 }
 0x733   :  { %v1948_v54 = vpop.f32.mrf.mxu0 }
 0x734   :  { %v1216_v55 = vadd.f32 %v1948_v54, %v1657_v53 }
 0x735   :  { %v1207_v56 = vpop.f32.mrf.mxu0 }
 0x736   :  { %1950 = vmatpush3.msra.mxu1 %v1216_v55  ;;  %v1208_v58 = vadd.f32 %v1657_v53, %v1207_v56 }
 0x737   :  { %1951 = vmatprep.subr.mxu1 %v2287_v17 }
 0x738   :  { %1952 = vmatpush3.msra.mxu1 %v1213_v57 }
 0x739   :  { %1953 = vmatprep.subr.mxu1 %v2287_v17 }
 0x73a   :  { %1954 = vmatpush3.msra.mxu1 %v1208_v58 }
 0x73b   :  { %1955 = vmatprep.subr.mxu1 %v2287_v17 }
 0x73c   :  { %1956 = vmatpush3.msra.mxu1 %v1205_v59 }
 0x73d   :  { %1957 = vmatprep.subr.mxu1 %v2287_v17 }
 0x73e   :  { %1958 = vmatpush3.msra.mxu1 %v1200_v60 }
 0x73f   :  { %1959 = vmatprep.subr.mxu1 %v2287_v17 }
 0x740   :  { %1960 = vmatpush3.msra.mxu1 %v1197_v61 }
 0x741   :  { %1961 = vmatprep.subr.mxu1 %v2287_v17 }
 0x742   :  { %1962 = vmatpush3.msra.mxu1 %v1192_v62 }
 0x743   :  { %1963 = vmatprep.subr.mxu1 %v2287_v17 }
 0x744   :  { %1964 = vmatpush3.msra.mxu1 %v1189_v63 }
 0x745   :  { %1966 = vmatmul.mubr.msk.f32.vlgmr.msra.gmra.mxu1 %vm218_vm0, %v2289_v32  ;;  %1968 = vmatprep.subr.mxu1 %v2287_v17 }
 0x746   :  { %1984 = vmatprep.mubr.msk.f32.mxu1 %vm2288_vm2, %v2287_v17 }
 0x805   :  { %v1287_v0 = vpop.f32.mrf.mxu1 }
 0x806   :  { %v1291_v1 = vmul.f32 0.015625, %v1287_v0 }
 0x807   :  { %v1967_v2 = vpop.f32.mrf.mxu1 }
 0x808   :  { %v1295_v3 = vrot.slane %v1291_v1, %v2478_v35 }
 0x80a   :  { %v2554_v4 = vsub.f32 %v1216_v55, %v1295_v3  ;;  %v2556_v5 = vsub.f32 %v1213_v57, %v1295_v3  ;;  %v2560_v10 = vsub.f32 %v1208_v58, %v1295_v3  ;;  %v2564_v12 = vsub.f32 %v1205_v59, %v1295_v3 }
 0x80b   :  { %v1299_v14 = vsub.f32 %v1200_v60, %v1295_v3  ;;  %v1298_v16 = vsub.f32 %v1197_v61, %v1295_v3  ;;  %v1297_v19 = vsub.f32 %v1192_v62, %v1295_v3  ;;  %v1296_v20 = vsub.f32 %v1189_v63, %v1295_v3 }
 0x80c   :  { %v1311_v6 = vmul.f32 %v2554_v4, %v2554_v4  ;;  %v1310_v11 = vmul.f32 %v2556_v5, %v2556_v5  ;;  %v1309_v13 = vmul.f32 %v2560_v10, %v2560_v10  ;;  %v1308_v15 = vmul.f32 %v2564_v12, %v2564_v12 }
 0x80d   :  { %v1307_v18 = vmul.f32 %v1299_v14, %v1299_v14  ;;  %v1306_v7 = vmul.f32 %v1298_v16, %v1298_v16  ;;  %v1305_v21 = vmul.f32 %v1297_v19, %v1297_v19  ;;  %v1304_v8 = vmul.f32 %v1296_v20, %v1296_v20 }
 0x80e   :  { %1969 = vmatpush3.msra.mxu1 %v1311_v6 }
 0x80f   :  { %1970 = vmatprep.subr.mxu1 %v2287_v17 }
 0x810   :  { %1971 = vmatpush3.msra.mxu1 %v1310_v11  ;;  %v1670_v11 = vld [vmem:[%s2611_s15] ss:$0 sm:$0xff]  ;;  %s1586_s15 = sshll.u32 %s2290_s20, 4  ;;  %s1587_s15 = int_to_ptr.vmem [resolvable:$true] %s1586_s15 }
 0x811   :  { %1972 = vmatprep.subr.mxu1 %v2287_v17  ;;  %s2244_s21 = scalar_lea.vmem %s1587_s15, 1024  ;;  %p2249_p13 = scmp.lt.s32.totalorder %s1587_s15, %s1587_s15 }
 0x812   :  { %1973 = vmatpush3.msra.mxu1 %v1309_v13  ;;  %p2245_p12 = scmp.ne.s32.totalorder %s1587_s15, %s2244_s21  ;;  %p2250_p0 = scmp.lt.s32.totalorder %s2244_s21, %s2244_s21 }
 0x813   :  { %1974 = vmatprep.subr.mxu1 %v2287_v17 }
 0x814   :  { %1975 = vmatpush3.msra.mxu1 %v1308_v15  ;;  %p2251_p1 = por %p2250_p0, %p2249_p13 }
 0x815   :  { %1976 = vmatprep.subr.mxu1 %v2287_v17 }
 0x816   :  { %1977 = vmatpush3.msra.mxu1 %v1307_v18  ;;  %p2252_p2 = pnand %p2251_p1, %p2245_p12 }
 0x817   :  { %1978 = vmatprep.subr.mxu1 %v2287_v17 }
 0x818   :  { %1979 = vmatpush3.msra.mxu1 %v1306_v7 }
 0x819   :  { %1980 = vmatprep.subr.mxu1 %v2287_v17 }
 0x81a   :  { %1981 = vmatpush3.msra.mxu1 %v1305_v21 }
 0x81b   :  { %1982 = vmatprep.subr.mxu1 %v2287_v17  ;;  %v2077_v17 = vld [vmem:[#allocation14 + $0x10] sm:$0xff]  }
 0x81c   :  { %1983 = vmatpush3.msra.mxu1 %v1304_v8  ;;  %1997 = vmatprep.subr.bf16.mxu0 %v2077_v17 }
 0x81d   :  { %1985 = vmatmul.mubr.msk.f32.vlgmr.msra.gmra.mxu1 %vm218_vm0, %v2289_v32  ;;  %1998 = vmatpush3.bf16.msra.mxu0 %v2077_v17  ;;  %v2079_v32 = vld [vmem:[#allocation14] sm:$0xff]  }
 0x81e   :  { %1999 = vmatprep.subr.bf16.mxu0 %v2078_v26 }
 0x821   :  { %2000 = vmatpush3.bf16.msra.mxu0 %v2078_v26 }
 0x822   :  { %2001 = vmatprep.subr.bf16.mxu0 %v2079_v32 }
 0x825   :  { %2002 = vmatpush3.bf16.msra.mxu0 %v2079_v32 }
 0x8dd   :  { %v1378_v27 = vpop.f32.mrf.mxu1 }
 0x8de   :  { %v1382_v28 = vmul.f32 0.015625, %v1378_v27 }
 0x8df   :  { %v1986_v29 = vpop.f32.mrf.mxu1 }
 0x8e0   :  { %v1383_v30 = vadd.f32 1e-05, %v1382_v28 }
 0x8e2   :  { %2082 = vrsqrt.f32 %v1383_v30 }
 0x8ef   :  { %v2083_v31 = vpop.eup %2082 }
 0x8f0   :  { %v1388_v33 = vrot.slane %v2083_v31, %v2478_v35 }
 0x8f2   :  { %v1389_v36 = vmul.f32 %v1388_v33, %v1296_v20  ;;  %v1390_v37 = vmul.f32 %v1388_v33, %v1297_v19  ;;  %v1391_v38 = vmul.f32 %v1388_v33, %v1298_v16  ;;  %v1392_v39 = vmul.f32 %v1388_v33, %v1299_v14 }
 0x8f3   :  { %v1393_v41 = vmul.f32 %v1388_v33, %v2564_v12  ;;  %v1394_v42 = vmul.f32 %v1388_v33, %v2560_v10  ;;  %v1395_v43 = vmul.f32 %v1388_v33, %v2556_v5  ;;  %v1396_v35 = vmul.f32 %v1388_v33, %v2554_v4 }
 0x8f4   :  { %v1403_v44 = vmul.f32 %v1668_v34, %v1389_v36  ;;  %v1404_v45 = vmul.f32 %v1668_v34, %v1390_v37  ;;  %v1405_v46 = vmul.f32 %v1668_v34, %v1391_v38  ;;  %v1406_v47 = vmul.f32 %v1668_v34, %v1392_v39 }
 0x8f5   :  { %v1407_v48 = vmul.f32 %v1668_v34, %v1393_v41  ;;  %v1408_v49 = vmul.f32 %v1668_v34, %v1394_v42  ;;  %v1409_v56 = vmul.f32 %v1668_v34, %v1395_v43  ;;  %v1410_v57 = vmul.f32 %v1668_v34, %v1396_v35 }
 0x8f6   :  { %v1417_v50 = vadd.f32 %v1669_v40, %v1403_v44  ;;  %v1418_v51 = vadd.f32 %v1669_v40, %v1404_v45  ;;  %v1419_v52 = vadd.f32 %v1669_v40, %v1405_v46  ;;  %v1420_v53 = vadd.f32 %v1669_v40, %v1406_v47 }
 0x8f7   :  { %v1421_v54 = vadd.f32 %v1669_v40, %v1407_v48  ;;  %v1422_v55 = vadd.f32 %v1669_v40, %v1408_v49  ;;  %v1423_v2 = vadd.f32 %v1669_v40, %v1409_v56  ;;  %v1424_v3 = vadd.f32 %v1669_v40, %v1410_v57 }
 0x8f8   :  { %v1425_v58 = vmax.f32 %v1417_v50, 0.0  ;;  %v1426_v59 = vmax.f32 %v1418_v51, 0.0  ;;  %v1427_v60 = vmax.f32 %v1419_v52, 0.0  ;;  %v1428_v61 = vmax.f32 %v1420_v53, 0.0 }
 0x8f9   :  { %v1429_v62 = vmax.f32 %v1421_v54, 0.0  ;;  %v1430_v63 = vmax.f32 %v1422_v55, 0.0  ;;  %v1431_v5 = vmax.f32 %v1423_v2, 0.0  ;;  %v1432_v6 = vmax.f32 %v1424_v3, 0.0 }
 0x8fa   :  { %v1433_v0 = vpack.c.bf16 %v1426_v59, %v1425_v58  ;;  %v1434_v1 = vpack.c.bf16 %v1428_v61, %v1427_v60 }
 0x8fb   :  { %v1435_v4 = vpack.c.bf16 %v1430_v63, %v1429_v62  ;;  %v1436_v10 = vpack.c.bf16 %v1432_v6, %v1431_v5 }
 0x8fc   :  { %2003 = vmatprep.mubr.bf16.mxu0 %v1433_v0 }
 0x8fd   :  { %2004 = vmatmul.mubr.bf16.vlgmr.msra.gmra.mxu0 %v1434_v1 }
 0x8fe   :  { %2007 = vmatprep.mubr.bf16.mxu0 %v1435_v4 }
 0x905   :  { %2008 = vmatmul.mubr.bf16.gmra.mxu0 %v1436_v10 }
 0x9bd   :  { %v2005_v12 = vpop.f32.mrf.mxu0 }
 0x9be   :  { %v1551_v13 = vadd.f32 %v2005_v12, %v1670_v11 }
 0x9bf   :  { %v1542_v14 = vpop.f32.mrf.mxu0 }
 0x9c0   :  { %1575 = vst [vmem:[#allocation16 + $0x10] sm:$0xff] %v1551_v13  ;;  %v1543_v15 = vadd.f32 %v1670_v11, %v1542_v14 }
 0x9c1   :  { %v2006_v16 = vpop.f32.mrf.mxu0 }
 0x9c2   :  { %1573 = vst [vmem:[#allocation16] sm:$0xff] %v1543_v15  ;;  %v1554_v18 = vadd.f32 %v2006_v16, %v1670_v11 }
 0x9c3   :  { %v1545_v19 = vpop.f32.mrf.mxu0 }
 0x9c4   :  { %1576 = vst [vmem:[#allocation16 + $0x18] sm:$0xff] %v1554_v18  ;;  %v1546_v7 = vadd.f32 %v1670_v11, %v1545_v19 }
 0x9c5   :  { %v2009_v20 = vpop.f32.mrf.mxu0 }
 0x9c6   :  { %1574 = vst [vmem:[#allocation16 + $0x8] sm:$0xff] %v1546_v7  ;;  %v1567_v21 = vadd.f32 %v2009_v20, %v1670_v11 }
 0x9c7   :  { %v1558_v8 = vpop.f32.mrf.mxu0 }
 0x9c8   :  { %1579 = vst [vmem:[#allocation16 + $0x30] sm:$0xff] %v1567_v21  ;;  %v1559_v9 = vadd.f32 %v1670_v11, %v1558_v8 }
 0x9c9   :  { %v2010_v22 = vpop.f32.mrf.mxu0 }
 0x9ca   :  { %1577 = vst [vmem:[#allocation16 + $0x20] sm:$0xff] %v1559_v9  ;;  %v1570_v23 = vadd.f32 %v2010_v22, %v1670_v11 }
 0x9cb   :  { %v1561_v24 = vpop.f32.mrf.mxu0 }
 0x9cc   :  { %1580 = vst [vmem:[#allocation16 + $0x38] sm:$0xff] %v1570_v23  ;;  %v1562_v25 = vadd.f32 %v1670_v11, %v1561_v24 }
 0x9ce   :  { %1578 = vst [vmem:[#allocation16 + $0x28] sm:$0xff] %v1562_v25 }
 0x9cf   :  { %2255 = shalt.err (!%p2252_p2)
}
 0x9d0   :  { %s2291_s2 = smov 128   ;;  %s2292_s3 = smov 8  }
 0x9d1   :  { %1592 = dma.vmem_to_hbm [thread:$0]  %s1587_s15, 1024, %s2612_s16, [#allocation4], %s2291_s2, %s2291_s2, %s2292_s3  }
 0x9d2   :  { %2274 = dma.done.wait [#allocation4], 1024  }
 0x9d3   :  { %2275 = vsyncadd [#allocation4], 4294966272 }
 0x9d4   :  { %1596 = vsyncpa [#allocation3], 1 }
 0x9d5   :  { %1597 = vsyncpa [#allocation6], 1 }
 0x9d6   :  { %1598 = vsyncpa [#allocation9], 1 }
 0x9d7   :  { %1599 = vsyncpa [#allocation12], 1 }
 0x9d8   :  { %1600 = vsyncpa [#allocation15], 1 }
 0x9d9   :  { %1601 = vsyncpa [#allocation4], 1 }

</bundles_post_ra>
